<compile_context>
chip_gen: v7x
topology: tpu7x:2x2x1
jax: 0.10.0
libtpu: 0.0.40
codegen_flags: <defaults>
</compile_context>

<pallas_src>
import functools

import jax
import jax.numpy as jnp
from jax.experimental import pallas as pl
from jax.experimental.pallas import tpu as pltpu


def _round_up(x, m):
    return (x + m - 1) // m * m


# ----------------------------------------------------------------------------
# Pallas kernel 1: fused squared-distance + k-nearest-neighbour selection
# ----------------------------------------------------------------------------
def _knn_kernel(q_ref, pt_ref, idx_ref, *, k):
    """q_ref: [1, TS, C] query coords; pt_ref: [1, C, Npad] point coords (each coordinate
    plane lane-dense along N); idx_ref: [1, TS, k] int32 nearest-neighbour indices."""
    q = q_ref[0]                                    # [TS, C]
    p = pt_ref[0]                                   # [C, Npad]
    ts, c_dim = q.shape
    npad = p.shape[1]

    # Squared distance accumulated per coordinate plane on the VPU (C == 5).
    # (a-b)^2 form also avoids the small negative values of -2ab + |a|^2 + |b|^2.
    dist = None
    for c in range(c_dim):                          # static unroll
        d = q[:, c:c + 1] - p[c:c + 1, :]           # [TS, Npad] broadcast
        term = d * d
        dist = term if dist is None else dist + term

    # K-smallest selection: k masked-argmin passes.  torch.topk(largest=False,
    # sorted=False) leaves neighbour order unspecified; we emit ascending distance,
    # lowest index first on ties (order-invariant downstream).
    lanes = jax.lax.broadcasted_iota(jnp.int32, (ts, npad), 1)
    masked_out = jnp.float32(3.0e38)
    for j in range(k):                              # static unroll, k is small
        row_min = jnp.min(dist, axis=-1, keepdims=True)                   # [TS, 1]
        arg = jnp.min(jnp.where(dist <= row_min, lanes, npad),
                      axis=-1, keepdims=True)                             # [TS, 1]
        idx_ref[0, :, j:j + 1] = arg
        dist = jnp.where(lanes == arg, masked_out, dist)


def knn_pallas(new_xyz, xyz, k, *, tile_s=128):
    """Indices of the k nearest points in xyz [B,N,C] for each query in new_xyz [B,S,C].
    Returns int32 [B, S, k]."""
    B, S, C = new_xyz.shape
    _, N, _ = xyz.shape
    tile_s = _round_up(tile_s, 8)
    n_pad = _round_up(N, 128)                       # lane-dense distance rows
    ts = min(_round_up(S, 8), tile_s)
    s_pad = _round_up(S, ts)

    q = new_xyz.astype(jnp.float32)
    if s_pad != S:
        q = jnp.pad(q, ((0, 0), (0, s_pad - S), (0, 0)))
    # Transposed coordinates [B, C, Npad]; padded points sit far away so they never enter
    # the neighbour set (requires N >= k, which torch.topk needs anyway).
    pt = jnp.transpose(xyz.astype(jnp.float32), (0, 2, 1))
    if n_pad != N:
        pt = jnp.pad(pt, ((0, 0), (0, 0), (0, n_pad - N)), constant_values=1e6)

    idx = pl.pallas_call(
        functools.partial(_knn_kernel, k=k),
        out_shape=jax.ShapeDtypeStruct((B, s_pad, k), jnp.int32),
        grid=(B, s_pad // ts),
        in_specs=[
            pl.BlockSpec((1, ts, C), lambda b, s: (b, s, 0)),
            # same block revisited across the s axis -> DMA'd once per batch item
            pl.BlockSpec((1, C, n_pad), lambda b, s: (b, 0, 0)),
        ],
        out_specs=pl.BlockSpec((1, ts, k), lambda b, s: (b, s, 0)),
        compiler_params=pltpu.CompilerParams(
            dimension_semantics=("parallel", "parallel")),
    )(q, pt)
    return idx[:, :S, :]


# ----------------------------------------------------------------------------
# Pallas kernel 2: fused center/anchor normalization + affine
#   out = (alpha * rstd) * (grouped - mean) + beta
# ----------------------------------------------------------------------------
def _group_affine_kernel(g_ref, mean_ref, alpha_ref, beta_ref, out_ref):
    g = g_ref[0]                    # [TS, K, Cg]
    m = mean_ref[0]                 # [TS, 1, Cg]  (broadcast over K sublanes)
    a = alpha_ref[...]              # [1, 1, Cg]   (per-batch rstd already folded in)
    b = beta_ref[...]               # [1, 1, Cg]
    out_ref[0] = a * (g - m) + b


def group_affine_pallas(grouped, mean, alpha_scaled, beta, *, tile_s=256):
    """grouped [B,S,K,Cg], mean [B,S,1,Cg], alpha_scaled [B,1,Cg], beta [1,1,Cg]."""
    B, S, K, Cg = grouped.shape
    tile_s = _round_up(tile_s, 8)
    ts = min(_round_up(S, 8), tile_s)
    s_pad = _round_up(S, ts)

    g = grouped.astype(jnp.float32)
    m = mean.astype(jnp.float32)
    if s_pad != S:
        g = jnp.pad(g, ((0, 0), (0, s_pad - S), (0, 0), (0, 0)))
        m = jnp.pad(m, ((0, 0), (0, s_pad - S), (0, 0), (0, 0)))

    # TODO(synk): trailing (K, Cg) block dims are sub-128 on the lane axis; a fully
    # lane-dense flattened [B, S, K*Cg] slab needs an in-kernel relayout of the per-group
    # mean broadcast, so the padded store layout is kept here.
    out = pl.pallas_call(
        _group_affine_kernel,
        out_shape=jax.ShapeDtypeStruct((B, s_pad, K, Cg), jnp.float32),
        grid=(B, s_pad // ts),
        in_specs=[
            pl.BlockSpec((1, ts, K, Cg), lambda b, s: (b, s, 0, 0)),
            pl.BlockSpec((1, ts, 1, Cg), lambda b, s: (b, s, 0, 0)),
            pl.BlockSpec((1, 1, Cg), lambda b, s: (b, 0, 0)),
            pl.BlockSpec((1, 1, Cg), lambda b, s: (0, 0, 0)),
        ],
        out_specs=pl.BlockSpec((1, ts, K, Cg), lambda b, s: (b, s, 0, 0)),
        compiler_params=pltpu.CompilerParams(
            dimension_semantics=("parallel", "parallel")),
    )(g, m, alpha_scaled.astype(jnp.float32), beta.astype(jnp.float32))
    return out[:, :S]


# ----------------------------------------------------------------------------
# Plain-JAX glue (sequential / gather ops)
# ----------------------------------------------------------------------------
def farthest_point_sample(xyz, npoint):
    """Sequential FPS. torch.randint initial seed replaced by deterministic idx 0."""
    # TODO(synk): sequential, data-dependent argmax chain kept in lax.fori_loop (no clean
    # Pallas pipelining for a length-npoint dependent loop).
    B, N, _ = xyz.shape

    def body(i, state):
        distance, farthest, centroids = state
        centroids = centroids.at[:, i].set(farthest)
        centroid = jnp.take_along_axis(xyz, farthest[:, None, None], axis=1)  # [B,1,C]
        dist = jnp.sum((xyz - centroid) ** 2, axis=-1)                        # [B,N]
        distance = jnp.minimum(distance, dist)
        farthest = jnp.argmax(distance, axis=-1).astype(jnp.int32)
        return distance, farthest, centroids

    distance0 = jnp.full((B, N), 1e10, jnp.float32)
    farthest0 = jnp.zeros((B,), jnp.int32)
    centroids0 = jnp.zeros((B, npoint), jnp.int32)
    _, _, centroids = jax.lax.fori_loop(0, npoint, body,
                                        (distance0, farthest0, centroids0))
    return centroids


def index_points(points, idx):
    """points [B,N,C], idx [B,S] or [B,S,K] -> gathered [B,S,C] / [B,S,K,C]."""
    if idx.ndim == 2:
        return jnp.take_along_axis(points, idx[:, :, None], axis=1)
    B, S, K = idx.shape
    flat = jnp.take_along_axis(points, idx.reshape(B, S * K)[:, :, None], axis=1)
    return flat.reshape(B, S, K, points.shape[-1])


class LocalGrouperPallas:
    def __init__(self, channel, groups, kneighbors, use_xyz=True, sample='slow',
                 normalize='center', **kwargs):
        # TODO(synk): only the 'slow' FPS path is implemented; pointnet2_utils 'fast',
        # 'uniform_joints' and 'resample' sampling variants have no JAX equivalent here.
        self.groups = groups
        self.kneighbors = kneighbors
        self.use_xyz = use_xyz
        self.sample = sample
        self.normalize = normalize.lower() if normalize is not None else None
        if self.normalize not in ['center', 'anchor']:
            self.normalize = None
        if self.normalize is not None:
            add_channel = 5 if self.use_xyz else 0
            # deterministic init, exactly as nn.Parameter(torch.ones/zeros)
            self.affine_alpha = jnp.ones((channel + add_channel,), jnp.float32)
            self.affine_beta = jnp.zeros((channel + add_channel,), jnp.float32)

    def __call__(self, xyz, points):
        B, N, C = xyz.shape
        S = self.groups
        K = self.kneighbors

        fps_idx = farthest_point_sample(xyz, S)                 # [B, S]
        new_xyz = index_points(xyz, fps_idx)                    # [B, S, 5]
        new_points = index_points(points, fps_idx)              # [B, S, D]

        idx = knn_pallas(new_xyz, xyz, K)                       # Pallas kernel 1
        grouped_xyz = index_points(xyz, idx)                    # [B, S, K, 5]
        grouped_points = index_points(points, idx)              # [B, S, K, D]
        if self.use_xyz:
            grouped_points = jnp.concatenate([grouped_points, grouped_xyz], axis=-1)
        grouped_points = grouped_points.astype(jnp.float32)

        if self.normalize is not None:
            if self.normalize == 'center':
                mean = jnp.mean(grouped_points, axis=2, keepdims=True)       # [B,S,1,Cg]
            else:  # 'anchor'
                anc = (jnp.concatenate([new_points, new_xyz], axis=-1)
                       if self.use_xyz else new_points).astype(jnp.float32)
                mean = anc[:, :, None, :]                                    # [B,S,1,Cg]
            # torch.std((x - mean).reshape(B, -1), dim=-1): unbiased over the whole batch
            # item.  Computed as a tiny XLA pre-pass so kernel 2 can tile over S.
            std = jnp.std((grouped_points - mean).reshape(B, -1), axis=-1, ddof=1)  # [B]
            rstd = 1.0 / (std + 1e-5)
            Cg = grouped_points.shape[-1]
            alpha_scaled = self.affine_alpha.reshape(1, 1, Cg) * rstd[:, None, None]
            beta3 = self.affine_beta.reshape(1, 1, Cg)
            grouped_points = group_affine_pallas(grouped_points, mean,
                                                 alpha_scaled, beta3)        # kernel 2

        # anchor-feature broadcast + concat kept in XLA (pure data movement).
        rep = jnp.broadcast_to(new_points[:, :, None, :].astype(jnp.float32),
                               (B, S, K, new_points.shape[-1]))
        new_pts_all = jnp.concatenate([grouped_points, rep], axis=-1)
        return new_xyz, new_pts_all


# ----------------------------------------------------------------------------
# Pure-JAX reference (same FPS/gather helpers; XLA distance + argsort + normalization)
# ----------------------------------------------------------------------------
def _reference_forward(grouper, xyz, points):
    B, N, _ = xyz.shape
    S, K = grouper.groups, grouper.kneighbors
    fps_idx = farthest_point_sample(xyz, S)
    new_xyz = index_points(xyz, fps_idx)
    new_points = index_points(points, fps_idx)
    d = jnp.sum((new_xyz[:, :, None, :] - xyz[:, None, :, :]) ** 2, axis=-1)  # [B,S,N]
    idx = jnp.argsort(d, axis=-1)[:, :, :K]                                   # ascending
    grouped_xyz = index_points(xyz, idx)
    grouped_points = index_points(points, idx)
    if grouper.use_xyz:
        grouped_points = jnp.concatenate([grouped_points, grouped_xyz], axis=-1)
    grouped_points = grouped_points.astype(jnp.float32)
    if grouper.normalize is not None:
        if grouper.normalize == 'center':
            mean = jnp.mean(grouped_points, axis=2, keepdims=True)
        else:
            anc = (jnp.concatenate([new_points, new_xyz], axis=-1)
                   if grouper.use_xyz else new_points).astype(jnp.float32)
            mean = anc[:, :, None, :]
        std = jnp.std((grouped_points - mean).reshape(B, -1), axis=-1, ddof=1)
        grouped_points = (grouped_points - mean) / (std[:, None, None, None] + 1e-5)
        grouped_points = (grouper.affine_alpha.reshape(1, 1, 1, -1) * grouped_points
                          + grouper.affine_beta.reshape(1, 1, 1, -1))
    rep = jnp.broadcast_to(new_points[:, :, None, :].astype(jnp.float32),
                           (B, S, K, new_points.shape[-1]))
    return new_xyz, jnp.concatenate([grouped_points, rep], axis=-1)


# ----------------------------------------------------------------------------
if __name__ == "__main__":
    key = jax.random.PRNGKey(0)
    B, N = 2, 32
    CXYZ = 5       # this repo's "xyz" has 5 coords (see .view(B,1,5) in FPS)
    D = 8          # feature channels
    S = 8          # groups
    K = 4          # kneighbors

    k1, k2 = jax.random.split(key)
    xyz = jax.random.normal(k1, (B, N, CXYZ), dtype=jnp.float32)
    points = jax.random.normal(k2, (B, N, D), dtype=jnp.float32)

    grouper = LocalGrouperPallas(channel=D, groups=S, kneighbors=K,
                                 use_xyz=True, normalize='center')
    new_xyz, new_points = grouper(xyz, points)
    jax.block_until_ready((new_xyz, new_points))

    assert new_xyz.shape == (B, S, CXYZ), new_xyz.shape
    assert new_points.shape == (B, S, K, 2 * D + CXYZ), new_points.shape
    assert bool(jnp.all(jnp.isfinite(new_points)))

    ref_xyz, ref_points = _reference_forward(grouper, xyz, points)
    assert bool(jnp.allclose(new_xyz, ref_xyz))
    assert bool(jnp.allclose(new_points, ref_points, rtol=1e-4, atol=1e-4))

    # also exercise the (previously missing) 'anchor' normalization path
    grouper_a = LocalGrouperPallas(channel=D, groups=S, kneighbors=K,
                                   use_xyz=True, normalize='anchor')
    a_xyz, a_points = grouper_a(xyz, points)
    ra_xyz, ra_points = _reference_forward(grouper_a, xyz, points)
    jax.block_until_ready((a_xyz, a_points))
    assert bool(jnp.allclose(a_points, ra_points, rtol=1e-4, atol=1e-4))

    print("KERNEL_OK")
</pallas_src>

<mosaic_0001>
module attributes {stable_mosaic.version = 11 : i64} {
  func.func @_knn_kernel(%arg0: i32, %arg1: i32, %arg2: memref<1x8x5xf32, #tpu.memory_space<vmem>>, %arg3: memref<1x5x128xf32, #tpu.memory_space<vmem>>, %arg4: memref<1x8x4xi32, #tpu.memory_space<vmem>>) attributes {dimension_semantics = [#tpu.dimension_semantics<parallel>, #tpu.dimension_semantics<parallel>], iteration_bounds = array<i64: 2, 1>, scalar_prefetch = 0 : i64, scratch_operands = 0 : i64, tpu.core_type = #tpu.core_type<tc>, window_params = [{transform_indices = @transform_0, window_bounds = array<i64: 1, 8, 5>}, {transform_indices = @transform_1, window_bounds = array<i64: 1, 5, 128>}, {transform_indices = @transform_2, window_bounds = array<i64: 1, 8, 4>}]} {
    %c0 = arith.constant 0 : index
    %c0_0 = arith.constant 0 : index
    %c0_1 = arith.constant 0 : index
    %0 = vector.load %arg2[%c0, %c0_0, %c0_1] : memref<1x8x5xf32, #tpu.memory_space<vmem>>, vector<1x8x5xf32>
    %1 = vector.shape_cast %0 : vector<1x8x5xf32> to vector<8x5xf32>
    %c0_2 = arith.constant 0 : index
    %c0_3 = arith.constant 0 : index
    %c0_4 = arith.constant 0 : index
    %2 = vector.load %arg3[%c0_2, %c0_3, %c0_4] : memref<1x5x128xf32, #tpu.memory_space<vmem>>, vector<1x5x128xf32>
    %3 = vector.shape_cast %2 : vector<1x5x128xf32> to vector<5x128xf32>
    %4 = vector.extract_strided_slice %1 {offsets = [0, 0], sizes = [8, 1], strides = [1, 1]} : vector<8x5xf32> to vector<8x1xf32>
    %5 = vector.extract_strided_slice %3 {offsets = [0, 0], sizes = [1, 128], strides = [1, 1]} : vector<5x128xf32> to vector<1x128xf32>
    %6 = vector.broadcast %4 : vector<8x1xf32> to vector<8x128xf32>
    %7 = vector.broadcast %5 : vector<1x128xf32> to vector<8x128xf32>
    %8 = arith.subf %6, %7 : vector<8x128xf32>
    %9 = arith.mulf %8, %8 : vector<8x128xf32>
    %10 = vector.extract_strided_slice %1 {offsets = [0, 1], sizes = [8, 1], strides = [1, 1]} : vector<8x5xf32> to vector<8x1xf32>
    %11 = vector.extract_strided_slice %3 {offsets = [1, 0], sizes = [1, 128], strides = [1, 1]} : vector<5x128xf32> to vector<1x128xf32>
    %12 = vector.broadcast %10 : vector<8x1xf32> to vector<8x128xf32>
    %13 = vector.broadcast %11 : vector<1x128xf32> to vector<8x128xf32>
    %14 = arith.subf %12, %13 : vector<8x128xf32>
    %15 = arith.mulf %14, %14 : vector<8x128xf32>
    %16 = arith.addf %9, %15 : vector<8x128xf32>
    %17 = vector.extract_strided_slice %1 {offsets = [0, 2], sizes = [8, 1], strides = [1, 1]} : vector<8x5xf32> to vector<8x1xf32>
    %18 = vector.extract_strided_slice %3 {offsets = [2, 0], sizes = [1, 128], strides = [1, 1]} : vector<5x128xf32> to vector<1x128xf32>
    %19 = vector.broadcast %17 : vector<8x1xf32> to vector<8x128xf32>
    %20 = vector.broadcast %18 : vector<1x128xf32> to vector<8x128xf32>
    %21 = arith.subf %19, %20 : vector<8x128xf32>
    %22 = arith.mulf %21, %21 : vector<8x128xf32>
    %23 = arith.addf %16, %22 : vector<8x128xf32>
    %24 = vector.extract_strided_slice %1 {offsets = [0, 3], sizes = [8, 1], strides = [1, 1]} : vector<8x5xf32> to vector<8x1xf32>
    %25 = vector.extract_strided_slice %3 {offsets = [3, 0], sizes = [1, 128], strides = [1, 1]} : vector<5x128xf32> to vector<1x128xf32>
    %26 = vector.broadcast %24 : vector<8x1xf32> to vector<8x128xf32>
    %27 = vector.broadcast %25 : vector<1x128xf32> to vector<8x128xf32>
    %28 = arith.subf %26, %27 : vector<8x128xf32>
    %29 = arith.mulf %28, %28 : vector<8x128xf32>
    %30 = arith.addf %23, %29 : vector<8x128xf32>
    %31 = vector.extract_strided_slice %1 {offsets = [0, 4], sizes = [8, 1], strides = [1, 1]} : vector<8x5xf32> to vector<8x1xf32>
    %32 = vector.extract_strided_slice %3 {offsets = [4, 0], sizes = [1, 128], strides = [1, 1]} : vector<5x128xf32> to vector<1x128xf32>
    %33 = vector.broadcast %31 : vector<8x1xf32> to vector<8x128xf32>
    %34 = vector.broadcast %32 : vector<1x128xf32> to vector<8x128xf32>
    %35 = arith.subf %33, %34 : vector<8x128xf32>
    %36 = arith.mulf %35, %35 : vector<8x128xf32>
    %37 = arith.addf %30, %36 : vector<8x128xf32>
    %38 = tpu.iota {dimensions = array<i32: 1>} : vector<8x128xi32>
    %cst = arith.constant dense<0x7F800000> : vector<8xf32>
    %39 = vector.multi_reduction <minimumf>, %37, %cst [1] : vector<8x128xf32> to vector<8xf32>
    %40 = vector.shape_cast %39 : vector<8xf32> to vector<8x1xf32>
    %41 = vector.broadcast %40 : vector<8x1xf32> to vector<8x128xf32>
    %42 = arith.cmpf ole, %37, %41 : vector<8x128xf32>
    %c128_i32 = arith.constant 128 : i32
    %43 = vector.broadcast %c128_i32 : i32 to vector<8x128xi32>
    %44 = arith.select %42, %38, %43 : vector<8x128xi1>, vector<8x128xi32>
    %cst_5 = arith.constant dense<2147483647> : vector<8xi32>
    %45 = vector.multi_reduction <minsi>, %44, %cst_5 [1] : vector<8x128xi32> to vector<8xi32>
    %46 = vector.shape_cast %45 : vector<8xi32> to vector<8x1xi32>
    %c0_6 = arith.constant 0 : index
    %c0_7 = arith.constant 0 : index
    %c0_8 = arith.constant 0 : index
    %47 = vector.load %arg4[%c0_6, %c0_7, %c0_8] : memref<1x8x4xi32, #tpu.memory_space<vmem>>, vector<1x8x1xi32>
    %48 = vector.shape_cast %47 : vector<1x8x1xi32> to vector<8x1xi32>
    %49 = vector.shape_cast %46 : vector<8x1xi32> to vector<1x8x1xi32>
    tpu.vector_store %arg4[%c0_6, %c0_7, %c0_8], %49 {strides = array<i32>} : memref<1x8x4xi32, #tpu.memory_space<vmem>>, vector<1x8x1xi32>,
    %50 = vector.broadcast %46 : vector<8x1xi32> to vector<8x128xi32>
    %51 = arith.cmpi eq, %38, %50 : vector<8x128xi32>
    %cst_9 = arith.constant 3.000000e+38 : f32
    %52 = vector.broadcast %cst_9 : f32 to vector<8x128xf32>
    %53 = arith.select %51, %52, %37 : vector<8x128xi1>, vector<8x128xf32>
    %cst_10 = arith.constant dense<0x7F800000> : vector<8xf32>
    %54 = vector.multi_reduction <minimumf>, %53, %cst_10 [1] : vector<8x128xf32> to vector<8xf32>
    %55 = vector.shape_cast %54 : vector<8xf32> to vector<8x1xf32>
    %56 = vector.broadcast %55 : vector<8x1xf32> to vector<8x128xf32>
    %57 = arith.cmpf ole, %53, %56 : vector<8x128xf32>
    %c128_i32_11 = arith.constant 128 : i32
    %58 = vector.broadcast %c128_i32_11 : i32 to vector<8x128xi32>
    %59 = arith.select %57, %38, %58 : vector<8x128xi1>, vector<8x128xi32>
    %cst_12 = arith.constant dense<2147483647> : vector<8xi32>
    %60 = vector.multi_reduction <minsi>, %59, %cst_12 [1] : vector<8x128xi32> to vector<8xi32>
    %61 = vector.shape_cast %60 : vector<8xi32> to vector<8x1xi32>
    %c0_13 = arith.constant 0 : index
    %c0_14 = arith.constant 0 : index
    %c1 = arith.constant 1 : index
    %62 = vector.load %arg4[%c0_13, %c0_14, %c1] : memref<1x8x4xi32, #tpu.memory_space<vmem>>, vector<1x8x1xi32>
    %63 = vector.shape_cast %62 : vector<1x8x1xi32> to vector<8x1xi32>
    %64 = vector.shape_cast %61 : vector<8x1xi32> to vector<1x8x1xi32>
    tpu.vector_store %arg4[%c0_13, %c0_14, %c1], %64 {strides = array<i32>} : memref<1x8x4xi32, #tpu.memory_space<vmem>>, vector<1x8x1xi32>,
    %65 = vector.broadcast %61 : vector<8x1xi32> to vector<8x128xi32>
    %66 = arith.cmpi eq, %38, %65 : vector<8x128xi32>
    %cst_15 = arith.constant 3.000000e+38 : f32
    %67 = vector.broadcast %cst_15 : f32 to vector<8x128xf32>
    %68 = arith.select %66, %67, %53 : vector<8x128xi1>, vector<8x128xf32>
    %cst_16 = arith.constant dense<0x7F800000> : vector<8xf32>
    %69 = vector.multi_reduction <minimumf>, %68, %cst_16 [1] : vector<8x128xf32> to vector<8xf32>
    %70 = vector.shape_cast %69 : vector<8xf32> to vector<8x1xf32>
    %71 = vector.broadcast %70 : vector<8x1xf32> to vector<8x128xf32>
    %72 = arith.cmpf ole, %68, %71 : vector<8x128xf32>
    %c128_i32_17 = arith.constant 128 : i32
    %73 = vector.broadcast %c128_i32_17 : i32 to vector<8x128xi32>
    %74 = arith.select %72, %38, %73 : vector<8x128xi1>, vector<8x128xi32>
    %cst_18 = arith.constant dense<2147483647> : vector<8xi32>
    %75 = vector.multi_reduction <minsi>, %74, %cst_18 [1] : vector<8x128xi32> to vector<8xi32>
    %76 = vector.shape_cast %75 : vector<8xi32> to vector<8x1xi32>
    %c0_19 = arith.constant 0 : index
    %c0_20 = arith.constant 0 : index
    %c2 = arith.constant 2 : index
    %77 = vector.load %arg4[%c0_19, %c0_20, %c2] : memref<1x8x4xi32, #tpu.memory_space<vmem>>, vector<1x8x1xi32>
    %78 = vector.shape_cast %77 : vector<1x8x1xi32> to vector<8x1xi32>
    %79 = vector.shape_cast %76 : vector<8x1xi32> to vector<1x8x1xi32>
    tpu.vector_store %arg4[%c0_19, %c0_20, %c2], %79 {strides = array<i32>} : memref<1x8x4xi32, #tpu.memory_space<vmem>>, vector<1x8x1xi32>,
    %80 = vector.broadcast %76 : vector<8x1xi32> to vector<8x128xi32>
    %81 = arith.cmpi eq, %38, %80 : vector<8x128xi32>
    %cst_21 = arith.constant 3.000000e+38 : f32
    %82 = vector.broadcast %cst_21 : f32 to vector<8x128xf32>
    %83 = arith.select %81, %82, %68 : vector<8x128xi1>, vector<8x128xf32>
    %cst_22 = arith.constant dense<0x7F800000> : vector<8xf32>
    %84 = vector.multi_reduction <minimumf>, %83, %cst_22 [1] : vector<8x128xf32> to vector<8xf32>
    %85 = vector.shape_cast %84 : vector<8xf32> to vector<8x1xf32>
    %86 = vector.broadcast %85 : vector<8x1xf32> to vector<8x128xf32>
    %87 = arith.cmpf ole, %83, %86 : vector<8x128xf32>
    %c128_i32_23 = arith.constant 128 : i32
    %88 = vector.broadcast %c128_i32_23 : i32 to vector<8x128xi32>
    %89 = arith.select %87, %38, %88 : vector<8x128xi1>, vector<8x128xi32>
    %cst_24 = arith.constant dense<2147483647> : vector<8xi32>
    %90 = vector.multi_reduction <minsi>, %89, %cst_24 [1] : vector<8x128xi32> to vector<8xi32>
    %91 = vector.shape_cast %90 : vector<8xi32> to vector<8x1xi32>
    %c0_25 = arith.constant 0 : index
    %c0_26 = arith.constant 0 : index
    %c3 = arith.constant 3 : index
    %92 = vector.load %arg4[%c0_25, %c0_26, %c3] : memref<1x8x4xi32, #tpu.memory_space<vmem>>, vector<1x8x1xi32>
    %93 = vector.shape_cast %92 : vector<1x8x1xi32> to vector<8x1xi32>
    %94 = vector.shape_cast %91 : vector<8x1xi32> to vector<1x8x1xi32>
    tpu.vector_store %arg4[%c0_25, %c0_26, %c3], %94 {strides = array<i32>} : memref<1x8x4xi32, #tpu.memory_space<vmem>>, vector<1x8x1xi32>,
    return
  }
  func.func @transform_0(%arg0: i32, %arg1: i32) -> (i32, i32, i32) {
    %c0_i32 = arith.constant 0 : i32
    %c0_i32_0 = arith.constant 0 : i32
    return %arg0, %arg1, %c0_i32 : i32, i32, i32
  }
  func.func @transform_1(%arg0: i32, %arg1: i32) -> (i32, i32, i32) {
    %c0_i32 = arith.constant 0 : i32
    %c0_i32_0 = arith.constant 0 : i32
    %c0_i32_1 = arith.constant 0 : i32
    return %arg0, %c0_i32, %c0_i32_0 : i32, i32, i32
  }
  func.func @transform_2(%arg0: i32, %arg1: i32) -> (i32, i32, i32) {
    %c0_i32 = arith.constant 0 : i32
    %c0_i32_0 = arith.constant 0 : i32
    return %arg0, %arg1, %c0_i32 : i32, i32, i32
  }
}

</mosaic_0001>

<bundles_post_ra>
// kernel: tpu_custom_call.1
= control target key start
LH: loop header
LB: loop body
LE: loop exit
PB: predicated region body
PF: predicated region fallthrough
CT: control target
= control target key end

     0   :  { %s507_s9 = smov 0   ;;  %s509_s10 = smov 0   ;;  %s563_s0 = inlined_call_operand.vmem [shape: f32[2,8,5], index: 0, kind: input, shape index: {}]   ;;  %s564_s1 = inlined_call_operand.vmem [shape: f32[2,5,128], index: 1, kind: input, shape index: {}]   ;;  %s565_s2 = inlined_call_operand.vmem [shape: s32[2,8,4], index: 2, kind: output, shape index: {}]  }
   0x1   :  { %s511_s11 = smov 0  }
   0x2 LB: > { %s24_s12 = sadd.s32 1, %s481_s10  ;;  %p422_p0 = scmp.ge.s32.totalorder %s485_s11, 1  ;;  %s485_s11 = sphi %s511_s11, %s12_s11   ;;  %s481_s10 = sphi %s509_s10, %s567_s10   ;;  %s477_s9 = sphi %s507_s9, %s566_s9  }
   0x3   : > { %p26_p1 = scmp.ge.s32.totalorder %s24_s12, 2  ;;  %p139_p2 = scmp.lt.s32.totalorder %s485_s11, 3 }
   0x5   : > { %s569_s12 = smov (%p26_p1, %s24_s12), 0  ;;  %p140_p3 = pnand %p422_p0, %p139_p2 }
   0x6   : > { %p169_p4 = scmp.lt.s32.totalorder (!%p140_p3), %s477_s9, 1  ;;  %v487_v0 = vmov (!%p140_p3), 0   ;;  %v488_v1 = vmov (!%p140_p3), 2   ;;  %v489_v3 = vmov (!%p140_p3), 1   ;;  %v490_v4 = vmov (!%p140_p3), 3  }
   0x7   : > { %143 = sbr.rel (%p140_p3) target bundleno = 1922 (0x782), region = 28  ;;  %457 = vset.pattern.permute.xlu0 (!%p140_p3), %v487_v0  ;;  %459 = vset.pattern.permute.xlu1 (!%p140_p3), %v488_v1  ;;  %v491_v5 = vmov (!%p140_p3), 4   ;;  %v194_v6 = vlaneseq (!%p140_p3)  ;;  %vm264_vm2 = vcmask (!%p140_p3), 7168   ;;  %vm286_vm6 = vcmask (!%p140_p3), 15368  }
   0x8   : > { %vm308_vm10 = vcmask (!%p140_p3), 23568   ;;  %vm330_vm14 = vcmask (!%p140_p3), 31768  }
   0x9   : > { %v195_v7 = vshrl.u32 (!%p140_p3), %v194_v6, 7  ;;  %v535_v38 = vand.u32 (!%p140_p3), 127, %v194_v6 }
   0xb   : > { %v196_v8 = vsub.s32 (!%p140_p3), 0, %v195_v7  ;;  %v217_v10 = vsub.s32 (!%p140_p3), 2, %v195_v7  ;;  %v206_v11 = vsub.s32 (!%p140_p3), 1, %v195_v7  ;;  %v228_v15 = vsub.s32 (!%p140_p3), 3, %v195_v7 }
   0xc   : > { %v239_v18 = vsub.s32 (!%p140_p3), 4, %v195_v7 }
   0xe   : > { %s571_s9 = smov (!%p169_p4, %s477_s9), 1 }
   0xf   : > { %s525_s13 = sshll.u32 %s571_s9, 3 }
  0x10   : > { %s175_s16 = scalar_lea.vmem %s563_s0, %s525_s13  ;;  %s179_s19 = scalar_lea.vmem %s564_s1, %s525_s13 }
  0x11   : > { %v187_v2 = vld [vmem:[%s175_s16] sm:$0xff]  ;;  %s542_s22 = scalar_lea.vmem %s565_s2, %s525_s13 }
  0x12   : > { %191 = vperm.xlu0 %457, %v187_v2   ;;  %212 = vperm.xlu1 %459, %v187_v2   ;;  %v188_v9 = vld [vmem:[%s179_s19] sm:$0x1f] }
  0x13   : > { %v197_v12 = vrot.slane %v188_v9, %v196_v8  ;;  %v218_v16 = vrot.slane %v188_v9, %v217_v10  ;;  %v207_v17 = vrot.slane %v188_v9, %v206_v11  ;;  %v229_v20 = vrot.slane %v188_v9, %v228_v15 }
  0x14   : > { %v240_v25 = vrot.slane %v188_v9, %v239_v18 }
  0x16   : > { %458 = vset.pattern.permute.xlu0 %v489_v3  ;;  %460 = vset.pattern.permute.xlu1 %v490_v4 }
  0x17   : > { %201 = vperm.xlu0 %458, %v187_v2   ;;  %223 = vperm.xlu1 %460, %v187_v2  }
  0x1b   : > { %461 = vset.pattern.permute.xlu1 %v491_v5  ;;  %462 = vset.pattern.permute.xlu0 %v491_v5 }
  0x1c   : > { %234 = vperm.xlu1 %461, %v187_v2  }
  0x91   : > { %v192_v13 = vpop.permute.xlu0 %191  ;;  %v213_v14 = vpop.permute.xlu1 %212 }
  0x92   : > { %v198_v19 = vsub.f32 %v192_v13, %v197_v12  ;;  %v219_v23 = vsub.f32 %v213_v14, %v218_v16 }
  0x94   : > { %v199_v26 = vmul.f32 %v198_v19, %v198_v19  ;;  %v220_v29 = vmul.f32 %v219_v23, %v219_v23 }
  0x96   : > { %v202_v21 = vpop.permute.xlu0 %201  ;;  %v224_v22 = vpop.permute.xlu1 %223 }
  0x97   : > { %v208_v24 = vsub.f32 %v202_v21, %v207_v17  ;;  %v230_v28 = vsub.f32 %v224_v22, %v229_v20 }
  0x99   : > { %v209_v27 = vmul.f32 %v208_v24, %v208_v24  ;;  %v231_v34 = vmul.f32 %v230_v28, %v230_v28 }
  0x9b   : > { %v210_v30 = vadd.f32 %v209_v27, %v199_v26  ;;  %v235_v31 = vpop.permute.xlu1 %234 }
  0x9c   : > { %v241_v32 = vsub.f32 %v235_v31, %v240_v25 }
  0x9d   : > { %v221_v33 = vadd.f32 %v220_v29, %v210_v30 }
  0x9e   : > { %v242_v35 = vmul.f32 %v241_v32, %v241_v32 }
  0x9f   : > { %v232_v36 = vadd.f32 %v231_v34, %v221_v33 }
  0xa1   : > { %v243_v37 = vadd.f32 %v242_v35, %v232_v36 }
  0xa3   : > { %246 = vmin.xlane.f32.xlu0 %v243_v37 }
 0x130   : > { %v247_v39 = vpop.xlane.xlu0 %246 }
 0x131   : > { %vm248_vm0 = vcmp.le.f32.partialorder %v243_v37, %v247_v39 }
 0x132   : > { %v249_v40 = vsel %vm248_vm0, %v535_v38, 128 }
 0x133   : > { %v251_v41 = vshra.s32 %v249_v40, 16  ;;  %v250_v43 = vand.u32 65535, %v249_v40 }
 0x135   : > { %v253_v42 = vcvt.s32.f32 %v251_v41  ;;  %v252_v45 = vcvt.s32.f32 %v250_v43 }
 0x137   : > { %254 = vmin.xlane.f32.xlu1 %v253_v42 }
 0x1c4   : > { %v255_v44 = vpop.xlane.xlu1 %254 }
 0x1c5   : > { %vm256_vm1 = vcmp.eq.f32.partialorder %v253_v42, %v255_v44  ;;  %v261_v47 = vcvt.f32.s32 %v255_v44 }
 0x1c6   : > { %v257_v46 = vsel %vm256_vm1, %v252_v45, inf }
 0x1c7   : > { %258 = vmin.xlane.f32.xlu0 %v257_v46  ;;  %v262_v49 = vshll.u32 %v261_v47, 16 }
 0x254   : > { %v259_v48 = vpop.xlane.xlu0 %258 }
 0x255   : > { %v260_v50 = vcvt.f32.s32 %v259_v48 }
 0x257   : > { %v263_v51 = vadd.s32 %v262_v49, %v260_v50 }
 0x259   : > { %265 = vst.msk [vmem:[%s542_s22] sm:$0xff] %vm264_vm2, %v263_v51  ;;  %vm266_vm3 = vcmp.eq.s32.totalorder %v535_v38, %v263_v51 }
 0x25a   : > { %v267_v52 = vsel %vm266_vm3, 3e+38, %v243_v37 }
 0x25b   : > { %268 = vmin.xlane.f32.xlu0 %v267_v52 }
 0x2e8   : > { %v269_v53 = vpop.xlane.xlu0 %268 }
 0x2e9   : > { %vm270_vm4 = vcmp.le.f32.partialorder %v267_v52, %v269_v53 }
 0x2ea   : > { %v271_v54 = vsel %vm270_vm4, %v535_v38, 128 }
 0x2eb   : > { %v273_v55 = vshra.s32 %v271_v54, 16  ;;  %v272_v57 = vand.u32 65535, %v271_v54 }
 0x2ed   : > { %v275_v56 = vcvt.s32.f32 %v273_v55  ;;  %v274_v59 = vcvt.s32.f32 %v272_v57 }
 0x2ef   : > { %276 = vmin.xlane.f32.xlu1 %v275_v56 }
 0x37c   : > { %v277_v58 = vpop.xlane.xlu1 %276 }
 0x37d   : > { %vm278_vm5 = vcmp.eq.f32.partialorder %v275_v56, %v277_v58  ;;  %v283_v61 = vcvt.f32.s32 %v277_v58 }
 0x37e   : > { %v279_v60 = vsel %vm278_vm5, %v274_v59, inf }
 0x37f   : > { %280 = vmin.xlane.f32.xlu0 %v279_v60  ;;  %v284_v63 = vshll.u32 %v283_v61, 16 }
 0x40c   : > { %v281_v62 = vpop.xlane.xlu0 %280 }
 0x40d   : > { %v282_v0 = vcvt.f32.s32 %v281_v62 }
 0x40f   : > { %v285_v1 = vadd.s32 %v284_v63, %v282_v0 }
 0x411   : > { %287 = vst.msk [vmem:[%s542_s22] sm:$0xff] %vm286_vm6, %v285_v1  ;;  %vm288_vm7 = vcmp.eq.s32.totalorder %v535_v38, %v285_v1 }
 0x412   : > { %v289_v2 = vsel %vm288_vm7, 3e+38, %v267_v52 }
 0x413   : > { %290 = vmin.xlane.f32.xlu1 %v289_v2 }
 0x4a0   : > { %v291_v3 = vpop.xlane.xlu1 %290 }
 0x4a1   : > { %vm292_vm8 = vcmp.le.f32.partialorder %v289_v2, %v291_v3 }
 0x4a2   : > { %v293_v4 = vsel %vm292_vm8, %v535_v38, 128 }
 0x4a3   : > { %v295_v5 = vshra.s32 %v293_v4, 16  ;;  %v294_v7 = vand.u32 65535, %v293_v4 }
 0x4a5   : > { %v297_v6 = vcvt.s32.f32 %v295_v5  ;;  %v296_v9 = vcvt.s32.f32 %v294_v7 }
 0x4a7   : > { %298 = vmin.xlane.f32.xlu0 %v297_v6 }
 0x534   : > { %v299_v8 = vpop.xlane.xlu0 %298 }
 0x535   : > { %vm300_vm9 = vcmp.eq.f32.partialorder %v297_v6, %v299_v8  ;;  %v305_v11 = vcvt.f32.s32 %v299_v8 }
 0x536   : > { %v301_v10 = vsel %vm300_vm9, %v296_v9, inf }
 0x537   : > { %302 = vmin.xlane.f32.xlu1 %v301_v10  ;;  %v306_v13 = vshll.u32 %v305_v11, 16 }
 0x5c4   : > { %v303_v12 = vpop.xlane.xlu1 %302 }
 0x5c5   : > { %v304_v14 = vcvt.f32.s32 %v303_v12 }
 0x5c7   : > { %v307_v15 = vadd.s32 %v306_v13, %v304_v14 }
 0x5c9   : > { %309 = vst.msk [vmem:[%s542_s22] sm:$0xff] %vm308_vm10, %v307_v15  ;;  %vm310_vm11 = vcmp.eq.s32.totalorder %v535_v38, %v307_v15 }
 0x5ca   : > { %v311_v16 = vsel %vm310_vm11, 3e+38, %v289_v2 }
 0x5cb   : > { %312 = vmin.xlane.f32.xlu0 %v311_v16 }
 0x658   : > { %v313_v17 = vpop.xlane.xlu0 %312 }
 0x659   : > { %vm314_vm12 = vcmp.le.f32.partialorder %v311_v16, %v313_v17 }
 0x65a   : > { %v315_v18 = vsel %vm314_vm12, %v535_v38, 128 }
 0x65b   : > { %v317_v19 = vshra.s32 %v315_v18, 16  ;;  %v316_v21 = vand.u32 65535, %v315_v18 }
 0x65d   : > { %v319_v20 = vcvt.s32.f32 %v317_v19  ;;  %v318_v23 = vcvt.s32.f32 %v316_v21 }
 0x65f   : > { %320 = vmin.xlane.f32.xlu1 %v319_v20 }
 0x6ec   : > { %v321_v22 = vpop.xlane.xlu1 %320 }
 0x6ed   : > { %vm322_vm13 = vcmp.eq.f32.partialorder %v319_v20, %v321_v22  ;;  %v327_v25 = vcvt.f32.s32 %v321_v22 }
 0x6ee   : > { %v323_v24 = vsel %vm322_vm13, %v318_v23, inf }
 0x6ef   : > { %324 = vmin.xlane.f32.xlu0 %v323_v24  ;;  %v328_v27 = vshll.u32 %v327_v25, 16 }
 0x77c   : > { %v325_v26 = vpop.xlane.xlu0 %324 }
 0x77d   : > { %v326_v28 = vcvt.f32.s32 %v325_v26 }
 0x77f   : > { %v329_v29 = vadd.s32 %v328_v27, %v326_v28 }
 0x781   : > { %331 = vst.msk [vmem:[%s542_s22] sm:$0xff] %vm330_vm14, %v329_v29 }
 0x782 PF: > { %s12_s11 = sadd.s32 1, %s485_s11   ;;  %s566_s9 = smov %s481_s10 }
 0x783   : > { %p9_p5 = scmp.ge.s32.totalorder %s12_s11, 4   ;;  %s567_s10 = smov %s569_s12 }
 0x785   :  { %11 = sbr.rel (!%p9_p5) target bundleno = 2 (0x2), region = 61 }

</bundles_post_ra>
